<compile_context>
chip_gen: v5e
topology: v5e:2x2
jax: 0.10.0
libtpu: 0.0.40
codegen_flags: <defaults>
</compile_context>

<pallas_src>
import math

import jax
import jax.numpy as jnp
from jax.experimental import pallas as pl
from jax.experimental.pallas import tpu as pltpu


def _resolve_out_shape(x, shape):
    """torch.view semantics: (batch,) + shape, with at most one -1 inferred."""
    batch = x.shape[0]
    shape = tuple(int(s) for s in shape)
    total = x.size
    if shape.count(-1) > 1:
        raise ValueError(f"only one dimension can be inferred, got {shape}")
    if -1 in shape:
        known = batch * math.prod(s for s in shape if s != -1)
        if known == 0 or total % known != 0:
            raise ValueError(f"cannot view shape {x.shape} as {(batch,) + shape}")
        shape = tuple(total // known if s == -1 else s for s in shape)
    out_shape = (batch,) + shape
    if total != math.prod(out_shape):
        raise ValueError(f"cannot view array of shape {x.shape} as {out_shape}")
    return out_shape


def _lane_rows_view(total):
    """Pick a 2-D (rows, lanes) factoring of the flat element stream.

    Prefer the widest lane count that still leaves >= 8 rows; shape only
    matters for DMA descriptor friendliness since the copy never touches
    VMEM/vregs.
    """
    for lanes in (2048, 1024, 512, 256, 128):
        if total % lanes == 0 and total // lanes >= 8:
            return total // lanes, lanes
    for lanes in (2048, 1024, 512, 256, 128):
        if total % lanes == 0:
            return total // lanes, lanes
    return 1, total  # arbitrary sizes: single "row" — fine for a pure DMA copy


def _make_hbm_copy_kernel(row_splits):
    """HBM->HBM streaming copy: start all chunk DMAs, then wait on all."""

    def kernel(x_ref, o_ref, sem):
        copies = []
        for i, (r0, rlen) in enumerate(row_splits):
            cp = pltpu.make_async_copy(
                x_ref.at[pl.ds(r0, rlen), :],
                o_ref.at[pl.ds(r0, rlen), :],
                sem.at[i],
            )
            cp.start()
            copies.append(cp)
        for cp in copies:
            cp.wait()

    return kernel


def _materialized_copy(x2d):
    """Pallas HBM->HBM DMA copy of a 2-D contiguous array."""
    rows, lanes = x2d.shape
    total_bytes = rows * lanes * x2d.dtype.itemsize

    # A few large chunks (>= ~4 MiB each) keep multiple DMAs in flight on big
    # tensors; small tensors use one whole-array DMA.
    n_chunks = int(min(4, max(1, total_bytes // (4 * 1024 * 1024))))
    n_chunks = max(1, min(n_chunks, rows))
    base, rem = divmod(rows, n_chunks)
    row_splits = []
    r0 = 0
    for c in range(n_chunks):
        rlen = base + (1 if c < rem else 0)
        row_splits.append((r0, rlen))
        r0 += rlen

    return pl.pallas_call(
        _make_hbm_copy_kernel(row_splits),
        out_shape=jax.ShapeDtypeStruct((rows, lanes), x2d.dtype),
        in_specs=[pl.BlockSpec(memory_space=pl.ANY)],   # raw HBM ref, no auto-DMA
        out_specs=pl.BlockSpec(memory_space=pl.ANY),
        scratch_shapes=[pltpu.SemaphoreType.DMA((n_chunks,))],
        cost_estimate=pl.CostEstimate(
            flops=0, transcendentals=0, bytes_accessed=2 * total_bytes
        ),
    )(x2d)


def reshape_forward(x, shape, *, materialize=False):
    """Pallas-backed equivalent of Reshape(shape).forward(x).

    Default: zero-copy XLA metadata reshape (a contiguous view costs nothing).
    materialize=True: force a physical copy via a Pallas HBM->HBM DMA kernel.
    """
    out_shape = _resolve_out_shape(x, shape)

    if not materialize:
        # The reshape of contiguous data is free metadata — do not launch a
        # copy kernel (2x tensor-bytes of HBM traffic) for a view.
        return x.reshape(out_shape)

    total = x.size
    rows, lanes = _lane_rows_view(total)
    x2d = x.reshape(rows, lanes)          # metadata-only
    out2d = _materialized_copy(x2d)       # Pallas HBM->HBM DMA
    return out2d.reshape(out_shape)       # metadata-only


if __name__ == "__main__":
    key = jax.random.PRNGKey(0)
    # NCHW-style input consistent with a conv pipeline.
    x = jax.random.normal(key, (2, 4, 16, 16), dtype=jnp.float32)

    # Reshape((16, 64)): (2, 4, 16, 16) -> (2, 16, 64),
    # matching input.view((input.size(0),) + self.shape).
    target_shape = (16, 64)
    ref = x.reshape((x.shape[0],) + target_shape)

    # 1) Default zero-copy path (the recommended production path).
    out_view = jax.block_until_ready(reshape_forward(x, target_shape))
    assert out_view.shape == ref.shape and out_view.dtype == x.dtype
    assert bool(jnp.array_equal(out_view, ref))

    # 2) Forced-materialize path: exercises the Pallas HBM->HBM DMA kernel.
    out_copy = jax.block_until_ready(
        reshape_forward(x, target_shape, materialize=True)
    )
    assert out_copy.shape == ref.shape and out_copy.dtype == x.dtype
    assert bool(jnp.array_equal(out_copy, ref))

    print("KERNEL_OK")
</pallas_src>

<mosaic_0001>
module attributes {stable_mosaic.version = 11 : i64} {
  func.func @kernel(%arg0: memref<8x256xf32, #tpu.memory_space<any>>, %arg1: memref<8x256xf32, #tpu.memory_space<any>>, %arg2: memref<1x!tpu.dma_semaphore, #tpu.memory_space<semaphore_mem>>) attributes {dimension_semantics = [], scalar_prefetch = 0 : i64, scratch_operands = 1 : i64, tpu.core_type = #tpu.core_type<tc>} {
    %c0_i32 = arith.constant 0 : i32
    %c0_i32_0 = arith.constant 0 : i32
    %c0_i32_1 = arith.constant 0 : i32
    %0 = tpu.memref_slice %arg0[%c0_i32_0, %c0_i32_1] : memref<8x256xf32, #tpu.memory_space<any>> -> memref<8x256xf32, #tpu.memory_space<any>>
    %c0_i32_2 = arith.constant 0 : i32
    %c0_i32_3 = arith.constant 0 : i32
    %1 = tpu.memref_slice %arg1[%c0_i32_2, %c0_i32_3] : memref<8x256xf32, #tpu.memory_space<any>> -> memref<8x256xf32, #tpu.memory_space<any>>
    %2 = tpu.memref_slice %arg2[%c0_i32] : memref<1x!tpu.dma_semaphore, #tpu.memory_space<semaphore_mem>> -> memref<1x!tpu.dma_semaphore, #tpu.memory_space<semaphore_mem>>
    %3 = tpu.memref_squeeze %2 : memref<1x!tpu.dma_semaphore, #tpu.memory_space<semaphore_mem>> -> memref<!tpu.dma_semaphore, #tpu.memory_space<semaphore_mem>>
    tpu.enqueue_dma source(%0 : memref<8x256xf32, #tpu.memory_space<any>>) target(%1 : memref<8x256xf32, #tpu.memory_space<any>>) target_semaphore(%3 : memref<!tpu.dma_semaphore, #tpu.memory_space<semaphore_mem>>)
    %c0_i32_4 = arith.constant 0 : i32
    %c0_i32_5 = arith.constant 0 : i32
    %c0_i32_6 = arith.constant 0 : i32
    %4 = tpu.memref_slice %arg0[%c0_i32_5, %c0_i32_6] : memref<8x256xf32, #tpu.memory_space<any>> -> memref<8x256xf32, #tpu.memory_space<any>>
    %c0_i32_7 = arith.constant 0 : i32
    %c0_i32_8 = arith.constant 0 : i32
    %5 = tpu.memref_slice %arg1[%c0_i32_7, %c0_i32_8] : memref<8x256xf32, #tpu.memory_space<any>> -> memref<8x256xf32, #tpu.memory_space<any>>
    %6 = tpu.memref_slice %arg2[%c0_i32_4] : memref<1x!tpu.dma_semaphore, #tpu.memory_space<semaphore_mem>> -> memref<1x!tpu.dma_semaphore, #tpu.memory_space<semaphore_mem>>
    %7 = tpu.memref_squeeze %6 : memref<1x!tpu.dma_semaphore, #tpu.memory_space<semaphore_mem>> -> memref<!tpu.dma_semaphore, #tpu.memory_space<semaphore_mem>>
    tpu.wait_dma2 semaphore(%7 : memref<!tpu.dma_semaphore, #tpu.memory_space<semaphore_mem>>) src(%4 : memref<8x256xf32, #tpu.memory_space<any>>) dst(%5 : memref<8x256xf32, #tpu.memory_space<any>>)
    return
  }
}

</mosaic_0001>

<bundles_post_ra>
// kernel: tpu_custom_call.1
= control target key start
LH: loop header
LB: loop body
LE: loop exit
PB: predicated region body
PF: predicated region fallthrough
CT: control target
= control target key end

     0   :  { %s33_s12 = smov [#allocation2]   ;;  %s34_s13 = smov [#allocation3]   ;;  %s52_s0 = inlined_call_operand.hbm [shape: f32[8,256], index: 0, kind: input, shape index: {}]   ;;  %s53_s1 = inlined_call_operand.hbm [shape: f32[8,256], index: 1, kind: output, shape index: {}]  }
   0x1   :  { %s10_s8 = sshll.u32 %s52_s0, 4  ;;  %s12_s11 = sshll.u32 %s53_s1, 4  ;;  %s11_s8 = int_to_ptr.hbm [resolvable:$true] %s10_s8  ;;  %s13_s11 = int_to_ptr.hbm [resolvable:$true] %s12_s11 }
   0x2   :  { %s35_s14 = smov 0  }
   0x3   :  { %16 = dma.general %s11_s8, 256, %s13_s11, %s33_s12, %s34_s13, [#allocation4], %s35_s14, 0  }
   0x4   :  { %31 = dma.done.wait [#allocation2], 256 }
   0x5   :  { %32 = vsyncadd [#allocation2], 4294967040 }
   0x6   :  { %21 = vsyncmov [#allocation2] }
   0x9   :  { %s22_s15 = vpop.sfrf %21 }
   0xa   :  { %p27_p0 = scmp.ne.s32.totalorder %s22_s15, 0 }
   0xc   :  { %26 = shalt.err (%p27_p0)  }

</bundles_post_ra>
